<compile_context>
chip_gen: v7x
topology: tpu7x:2x2x1
jax: 0.10.0
libtpu: 0.0.40
codegen_flags: <defaults>
</compile_context>

<pallas_src>
import functools
import math

import jax
import jax.numpy as jnp
from jax import lax
from jax.experimental import pallas as pl
from jax.experimental.pallas import tpu as pltpu


# ---------------------------------------------------------------------------
# Hardware / sizing helpers
# ---------------------------------------------------------------------------

def _vmem_capacity_bytes() -> int:
    """Physical VMEM of the attached TPU generation (falls back to 128 MiB)."""
    try:
        return int(pltpu.get_tpu_info().vmem_capacity_bytes)
    except Exception:
        return 128 * 1024 * 1024


def _kv_block_spec(block_shape, index_map):
    """K/V BlockSpec, single-buffered: its block index only changes when the
    batch index changes, so double-buffering it just wastes a full K+V copy of
    VMEM (often the difference between fitting and not fitting on v7x)."""
    try:
        return pl.BlockSpec(block_shape, index_map, pipeline_mode=pl.Buffered(1))
    except TypeError:  # older BlockSpec without pipeline_mode
        return pl.BlockSpec(block_shape, index_map)


# ---------------------------------------------------------------------------
# Kernels
# ---------------------------------------------------------------------------

def _attention_full_kernel(q_ref, k_ref, v_ref, o_ref, a_ref, *, inv_scale):
    """One (batch, Sq-tile) step, full key axis resident.  Emits both outputs."""
    q = q_ref[0]                                       # (H, tq, Dk) native dtype
    k = k_ref[0]                                       # (H, Sk, Dk)
    v = v_ref[0]                                       # (H, Sk, Dk)

    # scores = Q @ K^T / sqrt(d_k): batched over heads, contraction on the last
    # dim of BOTH operands -> no materialized transpose of K.
    s = lax.dot_general(q, k, (((2,), (2,)), ((0,), (0,))),
                        preferred_element_type=jnp.float32)
    s = s * inv_scale                                  # (H, tq, Sk) f32

    # Numerically stable softmax over keys; exact normalization (no approx
    # reciprocal — its error is visible in the returned attention matrix).
    s = s - jnp.max(s, axis=-1, keepdims=True)
    p = jnp.exp(s)
    p = p / jnp.sum(p, axis=-1, keepdims=True)

    out = lax.dot_general(p.astype(v.dtype), v, (((2,), (1,)), ((0,), (0,))),
                          preferred_element_type=jnp.float32)

    o_ref[0] = out.astype(o_ref.dtype)
    a_ref[0] = p.astype(a_ref.dtype)


def _attention_flash_kernel(q_ref, k_ref, v_ref, o_ref, m_sc, l_sc, acc_sc, *,
                            inv_scale):
    """Flash-style step over one (batch, Sq-tile, Sk-tile): online softmax with
    f32 running max / denominator / accumulator in VMEM scratch."""
    kv = pl.program_id(2)

    @pl.when(kv == 0)
    def _init():
        m_sc[...] = jnp.full_like(m_sc, -jnp.inf)
        l_sc[...] = jnp.zeros_like(l_sc)
        acc_sc[...] = jnp.zeros_like(acc_sc)

    q = q_ref[0]                                       # (H, tq, Dk)
    k = k_ref[0]                                       # (H, tk, Dk)
    v = v_ref[0]                                       # (H, tk, Dk)

    s = lax.dot_general(q, k, (((2,), (2,)), ((0,), (0,))),
                        preferred_element_type=jnp.float32)
    s = s * inv_scale                                  # (H, tq, tk) f32

    m_prev = m_sc[...]
    m_new = jnp.maximum(m_prev, jnp.max(s, axis=-1, keepdims=True))
    alpha = jnp.exp(m_prev - m_new)
    p = jnp.exp(s - m_new)

    l_sc[...] = alpha * l_sc[...] + jnp.sum(p, axis=-1, keepdims=True)
    acc_sc[...] = alpha * acc_sc[...] + lax.dot_general(
        p.astype(v.dtype), v, (((2,), (1,)), ((0,), (0,))),
        preferred_element_type=jnp.float32)
    m_sc[...] = m_new

    @pl.when(kv == pl.num_programs(2) - 1)
    def _finalize():
        o_ref[0] = (acc_sc[...] / l_sc[...]).astype(o_ref.dtype)


# ---------------------------------------------------------------------------
# Wrappers
# ---------------------------------------------------------------------------

def _pick_q_tile(Sq, est_bytes, capacity):
    if Sq <= 128:
        return Sq
    budget = int(0.6 * capacity)
    for t in (512, 256, 128):
        if t <= Sq and est_bytes(t) <= budget:
            return t
    return 128


def _vmem_limit(est, capacity):
    return int(min(max(est + (16 << 20), 32 << 20), int(0.85 * capacity)))


def _attention_with_probs(query, key, val, inv_scale, a_dtype, q_tile, capacity):
    B, H, Sq, Dk = query.shape
    Sk = key.shape[2]
    itemsize = jnp.dtype(query.dtype).itemsize
    a_itemsize = jnp.dtype(a_dtype).itemsize

    def est_bytes(t):
        q_io = 2 * H * t * Dk * itemsize            # Q, double-buffered
        kv_io = 2 * H * Sk * Dk * itemsize          # K + V, single-buffered
        o_io = 2 * H * t * Dk * itemsize            # output, double-buffered
        a_io = 2 * H * t * Sk * a_itemsize          # attention matrix, double-buffered
        inter = H * t * (2 * Sk + Dk) * 4           # f32 scores/probs + f32 out
        return q_io + kv_io + o_io + a_io + inter

    if q_tile is None:
        q_tile = _pick_q_tile(Sq, est_bytes, capacity)
    num_q = pl.cdiv(Sq, q_tile)                     # partial tail tile is masked

    grid_spec = pltpu.PrefetchScalarGridSpec(
        num_scalar_prefetch=0,
        grid=(B, num_q),                            # b leading -> megacore splits batch
        in_specs=[
            pl.BlockSpec((1, H, q_tile, Dk), lambda b, qi: (b, 0, qi, 0)),
            _kv_block_spec((1, H, Sk, Dk), lambda b, qi: (b, 0, 0, 0)),
            _kv_block_spec((1, H, Sk, Dk), lambda b, qi: (b, 0, 0, 0)),
        ],
        out_specs=[
            pl.BlockSpec((1, H, q_tile, Dk), lambda b, qi: (b, 0, qi, 0)),
            pl.BlockSpec((1, H, q_tile, Sk), lambda b, qi: (b, 0, qi, 0)),
        ],
    )
    return pl.pallas_call(
        functools.partial(_attention_full_kernel, inv_scale=inv_scale),
        out_shape=(jax.ShapeDtypeStruct((B, H, Sq, Dk), query.dtype),
                   jax.ShapeDtypeStruct((B, H, Sq, Sk), a_dtype)),
        grid_spec=grid_spec,
        compiler_params=pltpu.CompilerParams(
            dimension_semantics=("parallel", "parallel"),
            vmem_limit_bytes=_vmem_limit(est_bytes(q_tile), capacity),
        ),
    )(query, key, val)


def _attention_flash(query, key, val, inv_scale, q_tile, k_tile, capacity):
    B, H, Sq, Dk = query.shape
    Sk = key.shape[2]
    itemsize = jnp.dtype(query.dtype).itemsize

    if k_tile is None:
        k_tile = Sk
        for t in (512, 256, 128):
            if Sk % t == 0:
                k_tile = t
                break
    assert Sk % k_tile == 0, "k_tile must divide Sk (key tiles are not masked)"
    num_k = Sk // k_tile

    def est_bytes(tq):
        io = 2 * H * (2 * tq + 2 * k_tile) * Dk * itemsize   # q,k,v,o double-buffered
        scratch = H * tq * (Dk + 2) * 4                      # m, l, acc (f32)
        inter = 2 * H * tq * k_tile * 4 + H * tq * Dk * 4    # f32 s/p + pv
        return io + scratch + inter

    if q_tile is None:
        q_tile = _pick_q_tile(Sq, est_bytes, capacity)
    num_q = pl.cdiv(Sq, q_tile)

    grid_spec = pltpu.PrefetchScalarGridSpec(
        num_scalar_prefetch=0,
        grid=(B, num_q, num_k),                     # kv innermost (reduction)
        in_specs=[
            pl.BlockSpec((1, H, q_tile, Dk), lambda b, qi, kv: (b, 0, qi, 0)),
            pl.BlockSpec((1, H, k_tile, Dk), lambda b, qi, kv: (b, 0, kv, 0)),
            pl.BlockSpec((1, H, k_tile, Dk), lambda b, qi, kv: (b, 0, kv, 0)),
        ],
        out_specs=pl.BlockSpec((1, H, q_tile, Dk), lambda b, qi, kv: (b, 0, qi, 0)),
        scratch_shapes=[
            pltpu.VMEM((H, q_tile, 1), jnp.float32),    # running max
            pltpu.VMEM((H, q_tile, 1), jnp.float32),    # running denominator
            pltpu.VMEM((H, q_tile, Dk), jnp.float32),   # output accumulator
        ],
    )
    return pl.pallas_call(
        functools.partial(_attention_flash_kernel, inv_scale=inv_scale),
        out_shape=jax.ShapeDtypeStruct((B, H, Sq, Dk), query.dtype),
        grid_spec=grid_spec,
        compiler_params=pltpu.CompilerParams(
            dimension_semantics=("parallel", "parallel", "arbitrary"),
            vmem_limit_bytes=_vmem_limit(est_bytes(q_tile), capacity),
        ),
    )(query, key, val)


def pallas_attention(query, key, val, d_model, n_head, *,
                     key_structure=None, val_structure=None, attention_mask=None,
                     return_attention=True, attention_dtype=None,
                     q_tile=None, k_tile=None):
    """Dot-product attention (Attention.forward, wordAttention path).

    query/key/val: [B, H, S, Dk] with Dk = d_model / n_head.
    Returns (final_output, attention_values) when return_attention=True
    (the module's semantics); (final_output, None) on the flash fast path
    that never materializes the B*H*Sq*Sk attention matrix.
    """
    # TODO(synk): key_structure / val_structure / attention_mask branches and
    # the config.wordAttention == False permute path are not implemented.
    assert key_structure is None and val_structure is None and attention_mask is None

    B, H, Sq, Dk = query.shape
    Sk = key.shape[2]
    assert d_model % n_head == 0 and Dk == d_model // n_head
    assert key.shape == (B, H, Sk, Dk) and val.shape == (B, H, Sk, Dk)

    inv_scale = 1.0 / math.sqrt(float(Dk))
    capacity = _vmem_capacity_bytes()
    a_dtype = jnp.dtype(attention_dtype) if attention_dtype is not None \
        else jnp.dtype(query.dtype)

    if return_attention:
        out, attn = _attention_with_probs(query, key, val, inv_scale, a_dtype,
                                          q_tile, capacity)
        return out, attn
    out = _attention_flash(query, key, val, inv_scale, q_tile, k_tile, capacity)
    return out, None


# ---------------------------------------------------------------------------
# Pure-JAX reference
# ---------------------------------------------------------------------------

def reference_attention(query, key, val):
    d_k = query.shape[-1]
    s = jnp.einsum("bhqd,bhkd->bhqk", query, key,
                   preferred_element_type=jnp.float32,
                   precision=lax.Precision.HIGHEST) / jnp.sqrt(jnp.float32(d_k))
    p = jax.nn.softmax(s, axis=-1)
    out = jnp.einsum("bhqk,bhkd->bhqd", p, val,
                     preferred_element_type=jnp.float32,
                     precision=lax.Precision.HIGHEST)
    return out.astype(query.dtype), p.astype(query.dtype)


if __name__ == "__main__":
    # Shapes consistent with the module: d_model=64, n_head=4 -> d_k=16.
    B, H, S, Dk = 2, 4, 8, 16
    d_model, n_head = H * Dk, H

    root = jax.random.PRNGKey(0)
    kq, kk, kv_ = jax.random.split(root, 3)
    query = jax.random.normal(kq, (B, H, S, Dk), dtype=jnp.float32)
    key_t = jax.random.normal(kk, (B, H, S, Dk), dtype=jnp.float32)
    val_t = jax.random.normal(kv_, (B, H, S, Dk), dtype=jnp.float32)

    ref_out, ref_attn = reference_attention(query, key_t, val_t)

    # Module-faithful path: (final_output, attention_values).
    out, attn = pallas_attention(query, key_t, val_t, d_model, n_head)
    out = jax.block_until_ready(out)
    attn = jax.block_until_ready(attn)
    assert jnp.allclose(out, ref_out, atol=2e-3, rtol=2e-3), "output mismatch"
    assert jnp.allclose(attn, ref_attn, atol=2e-3, rtol=2e-3), "attention mismatch"

    # Flash fast path (no attention-matrix writeback), exercising multiple KV tiles.
    B2, H2, Sq2, Sk2, Dk2 = 1, 2, 16, 256, 16
    k2q, k2k, k2v = jax.random.split(jax.random.PRNGKey(1), 3)
    q2 = jax.random.normal(k2q, (B2, H2, Sq2, Dk2), dtype=jnp.float32)
    k2 = jax.random.normal(k2k, (B2, H2, Sk2, Dk2), dtype=jnp.float32)
    v2 = jax.random.normal(k2v, (B2, H2, Sk2, Dk2), dtype=jnp.float32)
    out2, _ = pallas_attention(q2, k2, v2, H2 * Dk2, H2,
                               return_attention=False, q_tile=16, k_tile=128)
    out2 = jax.block_until_ready(out2)
    ref_out2, _ = reference_attention(q2, k2, v2)
    assert jnp.allclose(out2, ref_out2, atol=2e-3, rtol=2e-3), "flash output mismatch"

    print("KERNEL_OK")
</pallas_src>

<mosaic_0001>
module attributes {stable_mosaic.version = 11 : i64} {
  func.func @_attention_full_kernel(%arg0: i32, %arg1: i32, %arg2: memref<1x4x8x16xf32, #tpu.memory_space<vmem>>, %arg3: memref<1x4x8x16xf32, #tpu.memory_space<vmem>>, %arg4: memref<1x4x8x16xf32, #tpu.memory_space<vmem>>, %arg5: memref<1x4x8x16xf32, #tpu.memory_space<vmem>>, %arg6: memref<1x4x8x8xf32, #tpu.memory_space<vmem>>) attributes {dimension_semantics = [#tpu.dimension_semantics<parallel>, #tpu.dimension_semantics<parallel>], iteration_bounds = array<i64: 2, 1>, scalar_prefetch = 0 : i64, scratch_operands = 0 : i64, tpu.core_type = #tpu.core_type<tc>, window_params = [{transform_indices = @transform_0, window_bounds = array<i64: 1, 4, 8, 16>}, {pipeline_mode = #tpu.pipeline_mode<synchronous>, transform_indices = @transform_1, window_bounds = array<i64: 1, 4, 8, 16>}, {pipeline_mode = #tpu.pipeline_mode<synchronous>, transform_indices = @transform_2, window_bounds = array<i64: 1, 4, 8, 16>}, {transform_indices = @transform_3, window_bounds = array<i64: 1, 4, 8, 16>}, {transform_indices = @transform_4, window_bounds = array<i64: 1, 4, 8, 8>}]} {
    %c0 = arith.constant 0 : index
    %c0_0 = arith.constant 0 : index
    %c0_1 = arith.constant 0 : index
    %c0_2 = arith.constant 0 : index
    %0 = vector.load %arg2[%c0, %c0_0, %c0_1, %c0_2] : memref<1x4x8x16xf32, #tpu.memory_space<vmem>>, vector<1x4x8x16xf32>
    %1 = vector.shape_cast %0 : vector<1x4x8x16xf32> to vector<4x8x16xf32>
    %c0_3 = arith.constant 0 : index
    %c0_4 = arith.constant 0 : index
    %c0_5 = arith.constant 0 : index
    %c0_6 = arith.constant 0 : index
    %2 = vector.load %arg3[%c0_3, %c0_4, %c0_5, %c0_6] : memref<1x4x8x16xf32, #tpu.memory_space<vmem>>, vector<1x4x8x16xf32>
    %3 = vector.shape_cast %2 : vector<1x4x8x16xf32> to vector<4x8x16xf32>
    %c0_7 = arith.constant 0 : index
    %c0_8 = arith.constant 0 : index
    %c0_9 = arith.constant 0 : index
    %c0_10 = arith.constant 0 : index
    %4 = vector.load %arg4[%c0_7, %c0_8, %c0_9, %c0_10] : memref<1x4x8x16xf32, #tpu.memory_space<vmem>>, vector<1x4x8x16xf32>
    %5 = vector.shape_cast %4 : vector<1x4x8x16xf32> to vector<4x8x16xf32>
    %cst = arith.constant dense<0.000000e+00> : vector<4x8x8xf32>
    %6 = tpu.matmul %1, %3, %cst {dimension_numbers = #tpu.dot_dimension_numbers<[2], [2], [1], [1], [0, 0, 0, 1, 1, 1], [0], [0]>} : vector<4x8x16xf32>, vector<4x8x16xf32>, vector<4x8x8xf32> -> vector<4x8x8xf32>
    %cst_11 = arith.constant 2.500000e-01 : f32
    %7 = vector.broadcast %cst_11 : f32 to vector<4x8x8xf32>
    %8 = arith.mulf %6, %7 : vector<4x8x8xf32>
    %cst_12 = arith.constant dense<0xFF800000> : vector<4x8xf32>
    %9 = vector.multi_reduction <maximumf>, %8, %cst_12 [2] : vector<4x8x8xf32> to vector<4x8xf32>
    %10 = vector.shape_cast %9 : vector<4x8xf32> to vector<4x8x1xf32>
    %11 = vector.broadcast %10 : vector<4x8x1xf32> to vector<4x8x8xf32>
    %12 = arith.subf %8, %11 : vector<4x8x8xf32>
    %13 = math.exp %12 : vector<4x8x8xf32>
    %cst_13 = arith.constant dense<0.000000e+00> : vector<4x8xf32>
    %14 = vector.multi_reduction <add>, %13, %cst_13 [2] : vector<4x8x8xf32> to vector<4x8xf32>
    %15 = vector.shape_cast %14 : vector<4x8xf32> to vector<4x8x1xf32>
    %16 = vector.broadcast %15 : vector<4x8x1xf32> to vector<4x8x8xf32>
    %17 = arith.divf %13, %16 : vector<4x8x8xf32>
    %cst_14 = arith.constant dense<0.000000e+00> : vector<4x8x16xf32>
    %18 = tpu.matmul %17, %5, %cst_14 {dimension_numbers = #tpu.dot_dimension_numbers<[2], [1], [1], [2], [0, 0, 0, 1, 1, 2], [0], [0]>} : vector<4x8x8xf32>, vector<4x8x16xf32>, vector<4x8x16xf32> -> vector<4x8x16xf32>
    %c0_15 = arith.constant 0 : index
    %c0_16 = arith.constant 0 : index
    %c0_17 = arith.constant 0 : index
    %c0_18 = arith.constant 0 : index
    %19 = vector.load %arg5[%c0_15, %c0_16, %c0_17, %c0_18] : memref<1x4x8x16xf32, #tpu.memory_space<vmem>>, vector<1x4x8x16xf32>
    %20 = vector.shape_cast %19 : vector<1x4x8x16xf32> to vector<4x8x16xf32>
    %21 = vector.shape_cast %18 : vector<4x8x16xf32> to vector<1x4x8x16xf32>
    tpu.vector_store %arg5[%c0_15, %c0_16, %c0_17, %c0_18], %21 {strides = array<i32>} : memref<1x4x8x16xf32, #tpu.memory_space<vmem>>, vector<1x4x8x16xf32>,
    %c0_19 = arith.constant 0 : index
    %c0_20 = arith.constant 0 : index
    %c0_21 = arith.constant 0 : index
    %c0_22 = arith.constant 0 : index
    %22 = vector.load %arg6[%c0_19, %c0_20, %c0_21, %c0_22] : memref<1x4x8x8xf32, #tpu.memory_space<vmem>>, vector<1x4x8x8xf32>
    %23 = vector.shape_cast %22 : vector<1x4x8x8xf32> to vector<4x8x8xf32>
    %24 = vector.shape_cast %17 : vector<4x8x8xf32> to vector<1x4x8x8xf32>
    tpu.vector_store %arg6[%c0_19, %c0_20, %c0_21, %c0_22], %24 {strides = array<i32>} : memref<1x4x8x8xf32, #tpu.memory_space<vmem>>, vector<1x4x8x8xf32>,
    return
  }
  func.func @transform_0(%arg0: i32, %arg1: i32) -> (i32, i32, i32, i32) {
    %c0_i32 = arith.constant 0 : i32
    %c0_i32_0 = arith.constant 0 : i32
    %c0_i32_1 = arith.constant 0 : i32
    return %arg0, %c0_i32, %arg1, %c0_i32_0 : i32, i32, i32, i32
  }
  func.func @transform_1(%arg0: i32, %arg1: i32) -> (i32, i32, i32, i32) {
    %c0_i32 = arith.constant 0 : i32
    %c0_i32_0 = arith.constant 0 : i32
    %c0_i32_1 = arith.constant 0 : i32
    %c0_i32_2 = arith.constant 0 : i32
    return %arg0, %c0_i32, %c0_i32_0, %c0_i32_1 : i32, i32, i32, i32
  }
  func.func @transform_2(%arg0: i32, %arg1: i32) -> (i32, i32, i32, i32) {
    %c0_i32 = arith.constant 0 : i32
    %c0_i32_0 = arith.constant 0 : i32
    %c0_i32_1 = arith.constant 0 : i32
    %c0_i32_2 = arith.constant 0 : i32
    return %arg0, %c0_i32, %c0_i32_0, %c0_i32_1 : i32, i32, i32, i32
  }
  func.func @transform_3(%arg0: i32, %arg1: i32) -> (i32, i32, i32, i32) {
    %c0_i32 = arith.constant 0 : i32
    %c0_i32_0 = arith.constant 0 : i32
    %c0_i32_1 = arith.constant 0 : i32
    return %arg0, %c0_i32, %arg1, %c0_i32_0 : i32, i32, i32, i32
  }
  func.func @transform_4(%arg0: i32, %arg1: i32) -> (i32, i32, i32, i32) {
    %c0_i32 = arith.constant 0 : i32
    %c0_i32_0 = arith.constant 0 : i32
    %c0_i32_1 = arith.constant 0 : i32
    return %arg0, %c0_i32, %arg1, %c0_i32_0 : i32, i32, i32, i32
  }
}

</mosaic_0001>

<bundles_post_ra>
// kernel: tpu_custom_call.1
= control target key start
LH: loop header
LB: loop body
LE: loop exit
PB: predicated region body
PF: predicated region fallthrough
CT: control target
= control target key end

     0   :  { %10 = vsyncpa [#allocation3], 0  ;;  %s1939_s0 = inlined_call_operand.hbm [shape: f32[2,4,8,16], index: 0, kind: input, shape index: {}]   ;;  %s1940_s1 = inlined_call_operand.hbm [shape: f32[2,4,8,16], index: 1, kind: input, shape index: {}]   ;;  %s1941_s2 = inlined_call_operand.hbm [shape: f32[2,4,8,16], index: 2, kind: input, shape index: {}]   ;;  %s1942_s3 = inlined_call_operand.hbm [shape: f32[2,4,8,16], index: 3, kind: output, shape index: {0}]   ;;  %s1943_s4 = inlined_call_operand.hbm [shape: f32[2,4,8,8], index: 4, kind: output, shape index: {1}]  }
   0x1   :  { %12 = vsyncpa [#allocation3 + $0x1], 0 }
   0x2   :  { %13 = vsyncpa [#allocation6], 0 }
   0x3   :  { %14 = vsyncpa [#allocation4], 0 }
   0x4   :  { %16 = vsyncpa [#allocation4 + $0x1], 0 }
   0x5   :  { %17 = vsyncpa [#allocation10], 0 }
   0x6   :  { %19 = vsyncpa [#allocation10 + $0x1], 0  ;;  %s1580_s15 = smov 0   ;;  %s1582_s16 = smov 0  }
   0x7   :  { %s1584_s17 = smov 0   ;;  %s1586_s18 = smov 0  }
   0x8   :  { %s1588_s19 = smov 0   ;;  %s1590_s20 = smov 0  }
   0x9 LB: > { %s1136_s21 = sadd.s32 4294967295, %s1542_s20   ;;  %s1137_s22 = sadd.s32 4294967294, %s1542_s20   ;;  %s1542_s20 = sphi %s1590_s20, %s25_s20   ;;  %s1538_s19 = sphi %s1588_s19, %s1963_s19   ;;  %s1534_s18 = sphi %s1586_s18, %s1962_s18   ;;  %s1530_s17 = sphi %s1584_s17, %s1961_s17   ;;  %s1526_s16 = sphi %s1582_s16, %s1960_s16   ;;  %s1522_s15 = sphi %s1580_s15, %s1959_s15  }
   0xa   : > { %p59_p0 = scmp.ne.s32.totalorder %s1526_s16, %s1522_s15  ;;  %p60_p1 = scmp.eq.s32.totalorder %s1136_s21, 0 }
   0xb   : > { %p1612_p2 = scmp.eq.s32.totalorder %s1136_s21, 1  ;;  %p143_p3 = scmp.eq.s32.totalorder %s1137_s22, 1 }
   0xc   : > { %p1616_p4 = por %p60_p1, %p59_p0  ;;  %p1138_p5 = scmp.ge.s32.totalorder %s1542_s20, 1 }
   0xd   : > { %s1947_s23 = scalar_select %p1612_p2, 1, 0 }
   0xe   : > { %s1948_s24 = scalar_select %p1616_p4, 1, 0 }
   0xf   : > { %p1621_p6 = por %p143_p3, %p59_p0  ;;  %p178_p7 = scmp.lt.s32.totalorder %s1542_s20, 3 }
  0x10   : > { %s1626_s26 = sshll.u32 %s1534_s18, 9  ;;  %s1544_s5 = smov [#allocation5]  }
  0x11   : > { %s1949_s25 = scalar_select %p1621_p6, 1, 0 }
  0x12   : > { %p1628_p8 = pnand %p1138_p5, %p178_p7  ;;  %s1636_s30 = scalar_lea.hbm %s1940_s1, %s1626_s26 }
  0x13   : > { %s193_s6 = sshll.u32 %s1544_s5, 4  ;;  %s1646_s9 = scalar_lea.hbm %s1941_s2, %s1626_s26  ;;  %s1640_s6 = int_to_ptr.vmem [resolvable:$true] %s193_s6 }
  0x14   : > { %s1950_s27 = scalar_select %p1628_p8, 1, 0 }
  0x15   : > { %p1242_p9 = pneg %p1628_p8  ;;  %s1545_s11 = smov [#allocation7]  }
  0x16   : > { %s1655_s12 = sshll.u32 %s1545_s11, 4  ;;  %s1334_s13 = scalar_lea.hbm %s1636_s30, 512  ;;  %s210_s12 = int_to_ptr.vmem [resolvable:$true] %s1655_s12 }
  0x17   : > { %p1650_p10 = pnand %p1242_p9, %p1616_p4  ;;  %p1335_p12 = scmp.ne.s32.totalorder %s1636_s30, %s1334_s13 }
  0x18   : > { %s1339_s21 = scalar_lea.hbm %s1940_s1, 1024  ;;  %p1340_p3 = scmp.lt.u32.totalorder %s1636_s30, %s1940_s1 }
  0x19   : > { %p1336_p13 = pneg %p1650_p10  ;;  %p1341_p5 = scmp.lt.u32.totalorder %s1339_s21, %s1334_s13 }
  0x1a   : > { %p1343_p9 = scmp.lt.u32.totalorder %s1334_s13, %s1636_s30 }
  0x1b   : > { %p1337_p0 = pnand %p1336_p13, %p1335_p12  ;;  %p1342_p7 = por %p1341_p5, %p1340_p3 }
  0x1d   : > { %p1338_p1 = pneg %p1337_p0  ;;  %p1344_p11 = por %p1343_p9, %p1342_p7 }
  0x1f   : > { %p1345_p6 = pnand %p1344_p11, %p1338_p1 }
  0x21   : > { %1348 = shalt.err (!%p1345_p6)
}
  0x22   : > { %s1349_s29 = scalar_lea.vmem %s1640_s6, 512  ;;  %p1357_p8 = scmp.lt.s32.totalorder %s1640_s6, %s1640_s6 }
  0x23   : > { %p1350_p12 = scmp.ne.s32.totalorder %s1640_s6, %s1349_s29  ;;  %p1358_p2 = scmp.lt.s32.totalorder %s1349_s29, %s1349_s29 }
  0x25   : > { %p1352_p0 = pnand %p1350_p12, %p1336_p13  ;;  %p1359_p3 = por %p1358_p2, %p1357_p8 }
  0x27   : > { %p1353_p4 = pneg %p1352_p0 }
  0x29   : > { %p1360_p5 = pnand %p1359_p3, %p1353_p4 }
  0x2b   : > { %1363 = shalt.err (!%p1360_p5)
}
  0x2c   : > { %s1546_s5 = smov 128   ;;  %s1547_s7 = smov 8  }
  0x2d   : > { %1245 = dma.hbm_to_vmem [thread:$0]  (!%p1650_p10), %s1636_s30, 512, %s1640_s6, [#allocation6], %s1546_s5, %s1546_s5, %s1547_s7  }
  0x2e   : > { %s1364_s8 = scalar_lea.hbm %s1646_s9, 512  ;;  %s1369_s14 = scalar_lea.hbm %s1941_s2, 1024 }
  0x2f   : > { %p1365_p2 = scmp.ne.s32.totalorder %s1646_s9, %s1364_s8  ;;  %p1370_p8 = scmp.lt.u32.totalorder %s1646_s9, %s1941_s2 }
  0x30   : > { %p1371_p11 = scmp.lt.u32.totalorder %s1369_s14, %s1364_s8  ;;  %p1373_p7 = scmp.lt.u32.totalorder %s1364_s8, %s1646_s9 }
  0x31   : > { %p1367_p4 = pnand %p1365_p2, %p1336_p13 }
  0x32   : > { %p1372_p1 = por %p1371_p11, %p1370_p8 }
  0x33   : > { %p1368_p6 = pneg %p1367_p4 }
  0x34   : > { %p1374_p9 = por %p1373_p7, %p1372_p1 }
  0x36   : > { %p1375_p12 = pnand %p1374_p9, %p1368_p6 }
  0x38   : > { %1378 = shalt.err (!%p1375_p12)
}
  0x39   : > { %s1379_s30 = scalar_lea.vmem %s210_s12, 512  ;;  %p1387_p2 = scmp.lt.s32.totalorder %s210_s12, %s210_s12 }
  0x3a   : > { %p1380_p0 = scmp.ne.s32.totalorder %s210_s12, %s1379_s30  ;;  %p1388_p4 = scmp.lt.s32.totalorder %s1379_s30, %s1379_s30 }
  0x3c   : > { %p1382_p3 = pnand %p1380_p0, %p1336_p13  ;;  %p1389_p8 = por %p1388_p4, %p1387_p2 }
  0x3e   : > { %p1383_p5 = pneg %p1382_p3 }
  0x40   : > { %p1390_p11 = pnand %p1389_p8, %p1383_p5 }
  0x42   : > { %1393 = shalt.err (!%p1390_p11)
}
  0x43   : > { %1248 = dma.hbm_to_vmem [thread:$0]  (!%p1650_p10), %s1646_s9, 512, %s210_s12, [#allocation6], %s1546_s5, %s1546_s5, %s1547_s7  }
  0x44   : > { %s37_s6 = sadd.s32 1, %s1538_s19  ;;  %s46_s22 = sadd.s32 1, %s1530_s17 }
  0x45   : > { %p39_p13 = scmp.ge.s32.totalorder %s37_s6, 2  ;;  %p53_p6 = scmp.ne.s32.totalorder %s1530_s17, %s1526_s16 }
  0x46   : > { %p54_p1 = scmp.eq.s32.totalorder %s1542_s20, 0  ;;  %p1260_p7 = scmp.lt.s32.totalorder %s1542_s20, 2 }
  0x47   : > { %s1965_s6 = smov (%p39_p13, %s37_s6), 0  ;;  %p1952_p12 = scmp.ne.s32.totalorder %s1947_s23, 0 }
  0x48   : > { %p55_p9 = por %p54_p1, %p53_p6  ;;  %s41_s28 = ssub.s32 %s1538_s19, %s1965_s6 }
  0x49   : > { %p1719_p0 = por %p1952_p12, %p53_p6  ;;  %s223_s29 = sand.u32 1, %s1530_s17  }
  0x4a   : > { %p44_p3 = scmp.eq.s32.totalorder %s41_s28, 0  ;;  %s1144_s9 = sshll.u32 %s223_s29, 5 }
  0x4b   : > { %s1173_s12 = sshll.u32 %s1538_s19, 9  ;;  %s227_s23 = scalar_lea.vmem [#allocation2], %s1144_s9 }
  0x4c   : > { %s1728_s8 = scalar_select %p44_p3, %s1530_s17, %s46_s22  }
  0x4d   : > { %s1733_s14 = scalar_lea.hbm %s1939_s0, %s1173_s12  ;;  %s235_s18 = sshll.u32 %s227_s23, 4  ;;  %s1741_s18 = int_to_ptr.vmem [resolvable:$true] %s235_s18 }
  0x4e   : > { %p1737_p10 = pnand %p1260_p7, %p55_p9  ;;  %s1743_s30 = scalar_lea.sflag [#allocation3], %s223_s29 }
  0x4f   : > { %s1394_s22 = scalar_lea.hbm %s1733_s14, 512  ;;  %s1399_s12 = scalar_lea.hbm %s1939_s0, 1024 }
  0x50   : > { %p1395_p5 = scmp.ne.s32.totalorder %s1733_s14, %s1394_s22  ;;  %p1396_p2 = pneg %p1737_p10 }
  0x51   : > { %p1400_p11 = scmp.lt.u32.totalorder %s1733_s14, %s1939_s0  ;;  %p1401_p13 = scmp.lt.u32.totalorder %s1399_s12, %s1394_s22 }
  0x52   : > { %p1397_p4 = pnand %p1396_p2, %p1395_p5  ;;  %p1403_p1 = scmp.lt.u32.totalorder %s1394_s22, %s1733_s14 }
  0x53   : > { %p1402_p6 = por %p1401_p13, %p1400_p11 }
  0x54   : > { %p1398_p8 = pneg %p1397_p4 }
  0x55   : > { %p1404_p7 = por %p1403_p1, %p1402_p6 }
  0x57   : > { %p1405_p9 = pnand %p1404_p7, %p1398_p8 }
  0x59   : > { %1408 = shalt.err (!%p1405_p9)
}
  0x5a   : > { %s1409_s29 = scalar_lea.vmem %s1741_s18, 512  ;;  %s1548_s23 = smov [#allocation2]  }
  0x5b   : > { %p1410_p12 = scmp.ne.s32.totalorder %s1741_s18, %s1409_s29  ;;  %s1414_s28 = sshll.u32 %s1548_s23, 4  ;;  %s1415_s28 = int_to_ptr.vmem [resolvable:$false] %s1414_s28 }
  0x5c   : > { %s1416_s9 = scalar_lea.vmem %s1415_s28, 1024  ;;  %p1417_p4 = scmp.lt.s32.totalorder %s1741_s18, %s1415_s28 }
  0x5d   : > { %p1412_p3 = pnand %p1410_p12, %p1396_p2  ;;  %p1418_p11 = scmp.lt.s32.totalorder %s1416_s9, %s1409_s29 }
  0x5f   : > { %p1413_p5 = pneg %p1412_p3  ;;  %p1419_p13 = por %p1418_p11, %p1417_p4 }
  0x61   : > { %p1420_p6 = pnand %p1419_p13, %p1413_p5 }
  0x63   : > { %1423 = shalt.err (!%p1420_p6)
}
  0x64   : > { %1252 = dma.hbm_to_vmem [thread:$0]  (!%p1737_p10), %s1733_s14, 512, %s1741_s18, %s1743_s30, %s1546_s5, %s1546_s5, %s1547_s7  }
  0x65   : > { %p1955_p2 = scmp.ne.s32.totalorder %s1950_s27, 0 }
  0x66   : > { %s1777_s22 = sand.u32 (!%p1955_p2), 1, %s1526_s16   ;;  %p1956_p8 = scmp.ne.s32.totalorder (!%p1955_p2), %s1948_s24, 0 }
  0x67   : > { %247 = sbr.rel (%p1955_p2) target bundleno = 881 (0x371), region = 32  ;;  %s1780_s12 = sshll.u32 (!%p1955_p2), %s1777_s22, 5 }
  0x68   : > { %s250_s21 = scalar_lea.sflag (!%p1955_p2), [#allocation3], %s1777_s22  ;;  %s253_s11 = scalar_lea.vmem (!%p1955_p2), [#allocation2], %s1780_s12 }
  0x6e   : > { %1505 = dma.done.wait (%p1956_p8), %s250_s21, 512  }
  0x6f   : > { %1507 = vsyncadd (%p1956_p8), %s250_s21, 4294966784 }
  0x70   : > { %1509 = dma.done.wait (%p1956_p8), [#allocation6], 1024  }
  0x71   : > { %1511 = vsyncadd (%p1956_p8), [#allocation6], 4294966272  ;;  %v1549_v0 = vmov 0.0   ;;  %vm1550_vm0 = vmmov 0   ;;  %vm303_vm1 = vcmask 130048   ;;  %v295_v1 = vld [vmem:[#allocation5] sm:$0xff]  ;;  %s1845_s7 = scalar_lea.hbm %s1943_s4, %s1626_s26 }
  0x72   : > { %1192 = vmatprep.subr.mxu0 %v1549_v0  ;;  %1194 = vmatprep.mubr.msk.f32.mxu0 %vm1550_vm0, %v1549_v0  ;;  %v296_v2 = vld [vmem:[#allocation5 + $0x8] sm:$0xff]  ;;  %v291_v3 = vld [vmem:[%s253_s11] sm:$0xff]  ;;  %v297_v5 = vld [vmem:[#allocation5 + $0x10] sm:$0xff]  ;;  %vm612_vm2 = vcmask 64512   ;;  %s290_s24 = scalar_lea.vmem [#allocation9], %s1780_s12  ;;  %s963_s18 = scalar_lea.sflag [#allocation10], %s1777_s22 }
  0x73   : > { %1197 = vmatprep.subr.mxu1 %v1549_v0  ;;  %1199 = vmatprep.mubr.msk.f32.mxu1 %vm1550_vm0, %v1549_v0  ;;  %v292_v4 = vld [vmem:[%s253_s11 + $0x8] sm:$0xff]  ;;  %v298_v6 = vld [vmem:[#allocation5 + $0x18] sm:$0xff]  ;;  %v293_v7 = vld [vmem:[%s253_s11 + $0x10] sm:$0xff]  ;;  %s994_s14 = sshll.u32 %s290_s24, 4  ;;  %s1551_s13 = smov [#allocation9]   ;;  %s1847_s14 = int_to_ptr.vmem [resolvable:$true] %s994_s14 }
  0x74   : > { %1193 = vmatpush3.xpose.msk.msra.mxu0 %vm303_vm1, %v295_v1  ;;  %1198 = vmatpush3.xpose.msk.msra.mxu1 %vm303_vm1, %v296_v2  ;;  %v294_v8 = vld [vmem:[%s253_s11 + $0x18] sm:$0xff]  ;;  %v299_v45 = vld [vmem:[#allocation7] sm:$0xff]  ;;  %v300_v46 = vld [vmem:[#allocation7 + $0x8] sm:$0xff]  ;;  %s1424_s30 = scalar_lea.vmem %s1847_s14, 512  ;;  %s1428_s29 = sshll.u32 %s1551_s13, 4  ;;  %s1429_s29 = int_to_ptr.vmem [resolvable:$false] %s1428_s29 }
  0x75   : > { %1202 = vmatprep.subr.mxu0 %v1549_v0  ;;  %1207 = vmatprep.subr.mxu1 %v1549_v0  ;;  %v301_v53 = vld [vmem:[#allocation7 + $0x10] sm:$0xff]  ;;  %v302_v57 = vld [vmem:[#allocation7 + $0x18] sm:$0xff]  ;;  %p1425_p10 = scmp.ne.s32.totalorder %s1847_s14, %s1424_s30  ;;  %s1430_s23 = scalar_lea.vmem %s1429_s29, 1024 }
  0x76   : > { %p1431_p9 = scmp.lt.s32.totalorder %s1847_s14, %s1429_s29  ;;  %p1432_p12 = scmp.lt.s32.totalorder %s1430_s23, %s1424_s30 }
  0x77   : > { %1195 = vmatmul.mubr.msk.f32.vlgmr.msra.gmra.mrb[0].mxu0 %vm303_vm1, %v291_v3  ;;  %1200 = vmatmul.mubr.msk.f32.vlgmr.msra.gmra.mrb[0].mxu1 %vm303_vm1, %v292_v4  ;;  %p1426_p1 = pnand %p1425_p10, %p1719_p0 }
  0x78   : > { %1203 = vmatpush3.xpose.msk.msra.mxu0 %vm303_vm1, %v297_v5  ;;  %1204 = vmatprep.mubr.msk.f32.mxu0 %vm1550_vm0, %v1549_v0  ;;  %p1433_p3 = por %p1432_p12, %p1431_p9 }
  0x79   : > { %1208 = vmatpush3.xpose.msk.msra.mxu1 %vm303_vm1, %v298_v6  ;;  %1209 = vmatprep.mubr.msk.f32.mxu1 %vm1550_vm0, %v1549_v0  ;;  %p1427_p7 = pneg %p1426_p1 }
  0x7a   : > { %1212 = vmatprep.subr.mxu0 %v1549_v0  ;;  %1217 = vmatprep.subr.mxu1 %v1549_v0 }
  0x7b   : > { %1205 = vmatmul.mubr.msk.f32.vlgmr.msra.gmra.mrb[2].mxu0 %vm303_vm1, %v293_v7  ;;  %p1434_p5 = pnand %p1433_p3, %p1427_p7 }
  0x7c   : > { %1210 = vmatmul.mubr.msk.f32.vlgmr.msra.gmra.mrb[2].mxu1 %vm303_vm1, %v294_v8  ;;  %1214 = vmatprep.mubr.msk.f32.mxu0 %vm1550_vm0, %v1549_v0 }
  0x7d   : > { %1219 = vmatprep.mubr.msk.f32.mxu1 %vm1550_vm0, %v1549_v0  ;;  %1213 = vmatpush3.msra.mxu0 %v299_v45 }
  0x7e   : > { %1222 = vmatprep.subr.mxu0 %v1549_v0  ;;  %1218 = vmatpush3.msra.mxu1 %v300_v46 }
  0x7f   : > { %1227 = vmatprep.subr.mxu1 %v1549_v0 }
 0x14a   : > { %v376_v9 = vpop.f32.mrb[0].mxu0  ;;  %v452_v10 = vpop.f32.mrb[0].mxu1 }
 0x14b   : > { %v608_v11 = vmul.f32 0.25, %v376_v9  ;;  %v1196_v12 = vpop.f32.mrb[1].mxu0  ;;  %v609_v13 = vmul.f32 0.25, %v452_v10  ;;  %v1201_v14 = vpop.f32.mrb[1].mxu1 }
 0x14d   : > { %v613_v15 = vsel %vm612_vm2, %v608_v11, -inf  ;;  %v616_v20 = vsel %vm612_vm2, %v609_v13, -inf }
 0x14e   : > { %614 = vmax.xlane.f32.xlu0 %v613_v15  ;;  %v528_v16 = vpop.f32.mrb[2].mxu0 }
 0x14f   : > { %v610_v17 = vmul.f32 0.25, %v528_v16  ;;  %v1206_v18 = vpop.f32.mrb[3].mxu0  ;;  %v604_v19 = vpop.f32.mrb[2].mxu1 }
 0x150   : > { %v611_v21 = vmul.f32 0.25, %v604_v19  ;;  %v1211_v22 = vpop.f32.mrb[3].mxu1 }
 0x151   : > { %v619_v23 = vsel %vm612_vm2, %v610_v17, -inf }
 0x152   : > { %617 = vmax.xlane.f32.xlu0 %v616_v20  ;;  %620 = vmax.xlane.f32.xlu1 %v619_v23  ;;  %v622_v24 = vsel %vm612_vm2, %v611_v21, -inf }
 0x156   : > { %623 = vmax.xlane.f32.xlu1 %v622_v24 }
 0x1db   : > { %v615_v25 = vpop.xlane.xlu0 %614 }
 0x1dc   : > { %v625_v26 = vsub.f32 %v608_v11, %v615_v25 }
 0x1de   : > { %v629_v27 = vmul.f32 1.442695, %v625_v26 }
 0x1df   : > { %v618_v28 = vpop.xlane.xlu0 %617  ;;  %v621_v29 = vpop.xlane.xlu1 %620 }
 0x1e0   : > { %1318 = vpow2.f32 %v629_v27  ;;  %v626_v30 = vsub.f32 %v609_v13, %v618_v28  ;;  %v627_v31 = vsub.f32 %v610_v17, %v621_v29 }
 0x1e2   : > { %v631_v32 = vmul.f32 1.442695, %v626_v30  ;;  %v633_v33 = vmul.f32 1.442695, %v627_v31 }
 0x1e3   : > { %v624_v34 = vpop.xlane.xlu1 %623 }
 0x1e4   : > { %1320 = vpow2.f32 %v631_v32  ;;  %v628_v35 = vsub.f32 %v611_v21, %v624_v34 }
 0x1e5   : > { %1322 = vpow2.f32 %v633_v33 }
 0x1e6   : > { %v635_v36 = vmul.f32 1.442695, %v628_v35 }
 0x1e8   : > { %1324 = vpow2.f32 %v635_v36 }
 0x1ea   : > { %v1319_v37 = vpop.eup %1318 }
 0x1eb   : > { %v637_v38 = vsel %vm612_vm2, %v1319_v37, 0.0 }
 0x1ec   : > { %638 = vadd.xlane.f32.xlu0 %v637_v38 }
 0x1ee   : > { %v1321_v39 = vpop.eup %1320 }
 0x1ef   : > { %v1323_v40 = vpop.eup %1322  ;;  %v640_v41 = vsel %vm612_vm2, %v1321_v39, 0.0 }
 0x1f0   : > { %641 = vadd.xlane.f32.xlu1 %v640_v41  ;;  %v643_v42 = vsel %vm612_vm2, %v1323_v40, 0.0 }
 0x1f1   : > { %644 = vadd.xlane.f32.xlu0 %v643_v42 }
 0x1f2   : > { %v1325_v43 = vpop.eup %1324 }
 0x1f3   : > { %v646_v44 = vsel %vm612_vm2, %v1325_v43, 0.0 }
 0x1f4   : > { %647 = vadd.xlane.f32.xlu1 %v646_v44 }
 0x279   : > { %v639_v47 = vpop.xlane.xlu0 %638 }
 0x27a   : > { %1326 = vrcp.f32 %v639_v47 }
 0x27d   : > { %v642_v48 = vpop.xlane.xlu1 %641 }
 0x27e   : > { %v645_v49 = vpop.xlane.xlu0 %644  ;;  %1328 = vrcp.f32 %v642_v48 }
 0x27f   : > { %1330 = vrcp.f32 %v645_v49 }
 0x281   : > { %v648_v50 = vpop.xlane.xlu1 %647 }
 0x282   : > { %1332 = vrcp.f32 %v648_v50 }
 0x284   : > { %v1327_v51 = vpop.eup %1326 }
 0x285   : > { %v650_v52 = vmul.f32 %v1327_v51, %v1319_v37 }
 0x287   : > { %953 = vst.msk [vmem:[%s290_s24] sm:$0xff] %vm612_vm2, %v650_v52  ;;  %1215 = vmatmul.mubr.msk.f32.vlgmr.msra.gmra.mrb[4].mxu0 %vm612_vm2, %v650_v52 }
 0x288   : > { %v1329_v54 = vpop.eup %1328  ;;  %1223 = vmatpush3.msra.mxu0 %v301_v53  ;;  %1224 = vmatprep.mubr.msk.f32.mxu0 %vm1550_vm0, %v1549_v0 }
 0x289   : > { %v1331_v55 = vpop.eup %1330  ;;  %v652_v56 = vmul.f32 %v1329_v54, %v1321_v39 }
 0x28a   : > { %v654_v58 = vmul.f32 %v1331_v55, %v1323_v40 }
 0x28b   : > { %954 = vst.msk [vmem:[%s290_s24 + $0x8] sm:$0xff] %vm612_vm2, %v652_v56  ;;  %1220 = vmatmul.mubr.msk.f32.vlgmr.msra.gmra.mrb[4].mxu1 %vm612_vm2, %v652_v56 }
 0x28c   : > { %v1333_v59 = vpop.eup %1332  ;;  %955 = vst.msk [vmem:[%s290_s24 + $0x10] sm:$0xff] %vm612_vm2, %v654_v58  ;;  %1225 = vmatmul.mubr.msk.f32.vlgmr.msra.gmra.mrb[6].mxu0 %vm612_vm2, %v654_v58  ;;  %1228 = vmatpush3.msra.mxu1 %v302_v57 }
 0x28d   : > { %v656_v60 = vmul.f32 %v1333_v59, %v1325_v43  ;;  %1229 = vmatprep.mubr.msk.f32.mxu1 %vm1550_vm0, %v1549_v0 }
 0x28f   : > { %956 = vst.msk [vmem:[%s290_s24 + $0x18] sm:$0xff] %vm612_vm2, %v656_v60  ;;  %1230 = vmatmul.mubr.msk.f32.vlgmr.msra.gmra.mrb[6].mxu1 %vm612_vm2, %v656_v60 }
 0x290   : > { %1437 = shalt.err (!%p1434_p5)
}
 0x291   : > { %s1438_s28 = scalar_lea.hbm %s1845_s7, 512  ;;  %s1442_s11 = scalar_lea.hbm %s1943_s4, 1024 }
 0x292   : > { %p1439_p4 = scmp.ne.s32.totalorder %s1845_s7, %s1438_s28  ;;  %p1443_p6 = scmp.lt.u32.totalorder %s1845_s7, %s1943_s4 }
 0x293   : > { %p1444_p2 = scmp.lt.u32.totalorder %s1442_s11, %s1438_s28  ;;  %p1446_p10 = scmp.lt.u32.totalorder %s1438_s28, %s1845_s7 }
 0x294   : > { %p1440_p11 = pnand %p1439_p4, %p1719_p0 }
 0x295   : > { %p1445_p8 = por %p1444_p2, %p1443_p6 }
 0x296   : > { %p1441_p13 = pneg %p1440_p11 }
 0x297   : > { %p1447_p1 = por %p1446_p10, %p1445_p8 }
 0x299   : > { %p1448_p7 = pnand %p1447_p1, %p1441_p13 }
 0x29b   : > { %1451 = shalt.err (!%p1448_p7)
}
 0x29c   : > { %s1552_s5 = smov 128   ;;  %s1553_s30 = smov 8  }
 0x29d   : > { %1239 = dma.vmem_to_hbm [thread:$0]  (%p1719_p0), %s1847_s14, 512, %s1845_s7, %s963_s18, %s1552_s5, %s1552_s5, %s1553_s30  }
 0x29e   : > { %s283_s13 = scalar_lea.vmem [#allocation8], %s1780_s12  ;;  %s1886_s14 = scalar_lea.hbm %s1942_s3, %s1626_s26 }
 0x29f   : > { %s977_s29 = sshll.u32 %s283_s13, 4  ;;  %s958_s18 = scalar_lea.sflag [#allocation4], %s1777_s22  ;;  %s1879_s29 = int_to_ptr.vmem [resolvable:$true] %s977_s29 }
 0x2a0   : > { %s1452_s23 = scalar_lea.vmem %s1879_s29, 512  ;;  %s1554_s28 = smov [#allocation8]  }
 0x2a1   : > { %p1453_p9 = scmp.ne.s32.totalorder %s1879_s29, %s1452_s23  ;;  %s1456_s9 = sshll.u32 %s1554_s28, 4  ;;  %s1457_s9 = int_to_ptr.vmem [resolvable:$false] %s1456_s9 }
 0x2a2   : > { %s1458_s21 = scalar_lea.vmem %s1457_s9, 1024  ;;  %p1459_p5 = scmp.lt.s32.totalorder %s1879_s29, %s1457_s9 }
 0x2a3   : > { %p1454_p12 = pnand %p1453_p9, %p1719_p0  ;;  %p1460_p4 = scmp.lt.s32.totalorder %s1458_s21, %s1452_s23 }
 0x2a5   : > { %p1455_p3 = pneg %p1454_p12  ;;  %p1461_p11 = por %p1460_p4, %p1459_p5 }
 0x2a7   : > { %p1462_p13 = pnand %p1461_p11, %p1455_p3 }
 0x35a   : > { %v726_v61 = vpop.f32.mrb[4].mxu0 }
 0x35b   : > { %949 = vst.msk [vmem:[%s283_s13] sm:$0xff] %vm303_vm1, %v726_v61  ;;  %v1216_v62 = vpop.f32.mrb[5].mxu0 }
 0x35e   : > { %v799_v63 = vpop.f32.mrb[4].mxu1 }
 0x35f   : > { %950 = vst.msk [vmem:[%s283_s13 + $0x8] sm:$0xff] %vm303_vm1, %v799_v63  ;;  %v872_v0 = vpop.f32.mrb[6].mxu0  ;;  %v1221_v1 = vpop.f32.mrb[5].mxu1 }
 0x360   : > { %951 = vst.msk [vmem:[%s283_s13 + $0x10] sm:$0xff] %vm303_vm1, %v872_v0  ;;  %v1226_v2 = vpop.f32.mrb[7].mxu0 }
 0x362   : > { %v945_v3 = vpop.f32.mrb[6].mxu1 }
 0x363   : > { %952 = vst.msk [vmem:[%s283_s13 + $0x18] sm:$0xff] %vm303_vm1, %v945_v3  ;;  %v1231_v4 = vpop.f32.mrb[7].mxu1 }
 0x364   : > { %1465 = shalt.err (!%p1462_p13)
}
 0x365   : > { %s1466_s26 = scalar_lea.hbm %s1886_s14, 512  ;;  %s1470_s27 = scalar_lea.hbm %s1942_s3, 1024 }
 0x366   : > { %p1467_p6 = scmp.ne.s32.totalorder %s1886_s14, %s1466_s26  ;;  %p1471_p10 = scmp.lt.u32.totalorder %s1886_s14, %s1942_s3 }
 0x367   : > { %p1472_p1 = scmp.lt.u32.totalorder %s1470_s27, %s1466_s26  ;;  %p1474_p9 = scmp.lt.u32.totalorder %s1466_s26, %s1886_s14 }
 0x368   : > { %p1468_p2 = pnand %p1467_p6, %p1719_p0 }
 0x369   : > { %p1473_p7 = por %p1472_p1, %p1471_p10 }
 0x36a   : > { %p1469_p8 = pneg %p1468_p2 }
 0x36b   : > { %p1475_p12 = por %p1474_p9, %p1473_p7 }
 0x36d   : > { %p1476_p3 = pnand %p1475_p12, %p1469_p8 }
 0x36f   : > { %1479 = shalt.err (!%p1476_p3)
}
 0x370   : > { %1238 = dma.vmem_to_hbm [thread:$0]  (%p1719_p0), %s1879_s29, 512, %s1886_s14, %s958_s18, %s1552_s5, %s1552_s5, %s1553_s30  }
 0x371 PF: > { %s1009_s12 = sand.u32 1, %s1522_s15   ;;  %p1957_p5 = scmp.ne.s32.totalorder %s1949_s25, 0 }
 0x372   : > { %p1958_p4 = scmp.ge.s32.totalorder %s1542_s20, 2  ;;  %s1010_s23 = scalar_lea.sflag [#allocation4], %s1009_s12 }
 0x374   : > { %p1254_p11 = pnand %p1958_p4, %p1957_p5 }
 0x376   : > { %1513 = dma.done.wait (!%p1254_p11), %s1010_s23, 512  }
 0x377   : > { %1515 = vsyncadd (!%p1254_p11), %s1010_s23, 4294966784  ;;  %s1019_s10 = scalar_lea.sflag [#allocation10], %s1009_s12 }
 0x378   : > { %1517 = dma.done.wait (!%p1254_p11), %s1019_s10, 512  }
 0x379   : > { %1519 = vsyncadd (!%p1254_p11), %s1019_s10, 4294966784  ;;  %s25_s20 = sadd.s32 1, %s1542_s20   ;;  %s1959_s15 = smov %s1526_s16 }
 0x37a   : > { %p22_p13 = scmp.ge.s32.totalorder %s25_s20, 4   ;;  %s1960_s16 = smov %s1530_s17 }
 0x37b   : > { %s1961_s17 = smov %s1728_s8  ;;  %s1962_s18 = smov %s1538_s19 }
 0x37c   : > { %s1963_s19 = smov %s1965_s6  ;;  %24 = sbr.rel (!%p22_p13) target bundleno = 9 (0x9), region = 104 }
 0x383   :  { %1024 = vsyncpa [#allocation3], 1 }
 0x384   :  { %1026 = vsyncpa [#allocation3 + $0x1], 1 }
 0x385   :  { %1027 = vsyncpa [#allocation6], 1 }
 0x386   :  { %1028 = vsyncpa [#allocation4], 1 }
 0x387   :  { %1030 = vsyncpa [#allocation4 + $0x1], 1 }
 0x388   :  { %1031 = vsyncpa [#allocation10], 1 }
 0x389   :  { %1033 = vsyncpa [#allocation10 + $0x1], 1 }

</bundles_post_ra>
